<compile_context>
chip_gen: v6e
topology: v6e:2x2x1
jax: 0.10.0
libtpu: 0.0.40
codegen_flags: <defaults>
</compile_context>

<pallas_src>
import functools

import jax
import jax.numpy as jnp
from jax.experimental import pallas as pl
from jax.experimental.pallas import tpu as pltpu


def _focal_loss_kernel(x0_ref, x1_ref, t_ref, out_ref, *, alpha, gamma,
                       n_valid, block_rows):
    # x0_ref, x1_ref : (block_rows, 128) logits for class 0 / class 1
    # t_ref          : (block_rows, 128) int8 targets in {0, 1}
    # out_ref        : (1, 8, 128) per-block, per-lane partial sums
    pid = pl.program_id(0)

    x0 = x0_ref[...].astype(jnp.float32)
    x1 = x1_ref[...].astype(jnp.float32)
    z1 = t_ref[...].astype(jnp.float32)        # one-hot plane for class 1
    z0 = 1.0 - z1                              # one-hot plane for class 0

    a = 2.0 * alpha - 1.0
    b = 1.0 - alpha

    def per_class(x, z):
        # Numerically stable BCE-with-logits: max(x,0) - x*z + log1p(exp(-|x|))
        e = jnp.exp(-jnp.abs(x))                              # EUP #1
        bce = jnp.maximum(x, 0.0) - x * z + jnp.log1p(e)      # EUP #2 (log1p)
        # pt = exp(-bce) == z*p + (1-z)*(1-p) with p = sigmoid(x).
        # Reuse e instead of spending a second exp.  (pl.reciprocal(1+e,
        # approx=True) would be cheaper still, at ~1e-3 relative accuracy.)
        p = jnp.where(x >= 0.0, 1.0, e) / (1.0 + e)           # EUP #3 (div)
        pt = (1.0 - p) + z * (2.0 * p - 1.0)
        one_m_pt = 1.0 - pt
        if gamma == 2.0:                    # trace-time constant: square, no pow
            w = one_m_pt * one_m_pt
        else:
            w = one_m_pt ** gamma
        at = z * a + b
        return at * w * bce

    loss = per_class(x0, z0) + per_class(x1, z1)    # (block_rows, 128)

    # Mask out padded positions (only the tail of the last block is padded).
    lanes = loss.shape[1]
    row = jax.lax.broadcasted_iota(jnp.int32, loss.shape, 0)
    lane = jax.lax.broadcasted_iota(jnp.int32, loss.shape, 1)
    idx = (pid * block_rows + row) * lanes + lane
    loss = jnp.where(idx < n_valid, loss, 0.0)

    # Fold sublanes down to an (8, 128) per-lane partial-sum plane.  The
    # reshape only splits the major dim on vreg boundaries, so this is pure
    # VPU adds (no XLU); the lone cross-lane reduce happens once in the
    # wrapper over n_blocks * 8 * 128 floats.
    out_ref[0] = loss.reshape(block_rows // 8, 8, lanes).sum(axis=0)


def focal_loss(inputs, targets, alpha=0.25, gamma=2.0, max_block_rows=512):
    """inputs: (B, T, 2) float logits; targets: (B, T) ints in {0, 1}."""
    B, T, C = inputs.shape
    assert C == 2, "FocalLoss expects 2-class logits on the last axis"
    assert max_block_rows % 32 == 0, "max_block_rows must be a multiple of 32"

    LANE = 128
    N = B * T                       # elements per class plane
    denom = float(N * C)            # mean over all B*T*2 elements

    rows = pl.cdiv(N, LANE)
    if rows <= max_block_rows:
        # Single block; multiple of 32 rows keeps f32/bf16/int8 tiles native.
        block_rows = max(32, pl.cdiv(rows, 32) * 32)
        n_blocks = 1
    else:
        block_rows = max_block_rows
        n_blocks = pl.cdiv(rows, block_rows)
    rows_pad = block_rows * n_blocks
    pad = rows_pad * LANE - N

    # Lane-dense class planes: the size-2 class axis comes off the lane axis.
    x0 = inputs[..., 0].reshape(-1)
    x1 = inputs[..., 1].reshape(-1)
    tz = targets.reshape(-1).astype(jnp.int8)     # compact targets: 1 B/elem
    if pad:
        x0 = jnp.pad(x0, (0, pad))
        x1 = jnp.pad(x1, (0, pad))
        tz = jnp.pad(tz, (0, pad))
    x0 = x0.reshape(rows_pad, LANE)
    x1 = x1.reshape(rows_pad, LANE)
    tz = tz.reshape(rows_pad, LANE)

    kernel = functools.partial(
        _focal_loss_kernel,
        alpha=float(alpha), gamma=float(gamma),
        n_valid=N, block_rows=block_rows,
    )
    in_spec = pl.BlockSpec((block_rows, LANE), lambda i: (i, 0))

    partials = pl.pallas_call(
        kernel,
        out_shape=jax.ShapeDtypeStruct((n_blocks, 8, LANE), jnp.float32),
        grid=(n_blocks,),
        in_specs=[in_spec, in_spec, in_spec],
        out_specs=pl.BlockSpec((1, 8, LANE), lambda i: (i, 0, 0)),
        compiler_params=pltpu.CompilerParams(
            # No carried accumulator -> grid is embarrassingly parallel; v7x
            # shards blocks across its two TensorCores.
            dimension_semantics=("parallel",),
            # Explicit, generation-safe limit (actual use ~1.2 MiB at 512 rows).
            vmem_limit_bytes=16 * 1024 * 1024,
        ),
    )(x0, x1, tz)

    # Tiny final reduction + mean normalization (one mul) outside the kernel.
    return jnp.sum(partials) * (1.0 / denom)


def _reference_focal_loss(inputs, targets, alpha=0.25, gamma=2.0):
    # Pure-JAX reference mirroring the PyTorch forward.
    x = inputs.astype(jnp.float32)
    z = jax.nn.one_hot(targets, 2, dtype=jnp.float32)
    bce = jnp.maximum(x, 0.0) - x * z + jnp.log1p(jnp.exp(-jnp.abs(x)))
    at = z * (2.0 * alpha - 1.0) + (1.0 - alpha)
    pt = jnp.exp(-bce)
    return jnp.mean(at * (1.0 - pt) ** gamma * bce)


if __name__ == "__main__":
    # Small shapes consistent with the module: batch=2, sequence length=8.
    B, T, C = 2, 8, 2
    key = jax.random.PRNGKey(0)
    k1, k2 = jax.random.split(key)
    inputs = jax.random.normal(k1, (B, T, C), dtype=jnp.float32)
    targets = jax.random.randint(k2, (B, T), 0, 2, dtype=jnp.int32)

    loss = jax.block_until_ready(focal_loss(inputs, targets, alpha=0.25, gamma=2.0))
    ref = jax.block_until_ready(_reference_focal_loss(inputs, targets, 0.25, 2.0))
    assert jnp.allclose(loss, ref, atol=1e-5, rtol=1e-4), (loss, ref)

    # Exercise the multi-block (grid > 1) + padding path with small tiles.
    B2, T2 = 2, 5000
    k3, k4 = jax.random.split(k2)
    inputs2 = jax.random.normal(k3, (B2, T2, C), dtype=jnp.float32)
    targets2 = jax.random.randint(k4, (B2, T2), 0, 2, dtype=jnp.int32)
    loss2 = jax.block_until_ready(focal_loss(inputs2, targets2, max_block_rows=32))
    ref2 = jax.block_until_ready(_reference_focal_loss(inputs2, targets2))
    assert jnp.allclose(loss2, ref2, atol=1e-5, rtol=1e-4), (loss2, ref2)

    print("KERNEL_OK")
</pallas_src>

<mosaic_0001>
module attributes {stable_mosaic.version = 11 : i64} {
  func.func @_focal_loss_kernel(%arg0: i32, %arg1: memref<32x128xf32, #tpu.memory_space<vmem>>, %arg2: memref<32x128xf32, #tpu.memory_space<vmem>>, %arg3: memref<32x128xi8, #tpu.memory_space<vmem>>, %arg4: memref<1x8x128xf32, #tpu.memory_space<vmem>>) attributes {dimension_semantics = [#tpu.dimension_semantics<parallel>], iteration_bounds = array<i64: 1>, scalar_prefetch = 0 : i64, scratch_operands = 0 : i64, tpu.core_type = #tpu.core_type<tc>, window_params = [{transform_indices = @transform_0, window_bounds = array<i64: 32, 128>}, {transform_indices = @transform_1, window_bounds = array<i64: 32, 128>}, {transform_indices = @transform_2, window_bounds = array<i64: 32, 128>}, {transform_indices = @transform_3, window_bounds = array<i64: 1, 8, 128>}]} {
    %c0 = arith.constant 0 : index
    %c0_0 = arith.constant 0 : index
    %0 = vector.load %arg1[%c0, %c0_0] : memref<32x128xf32, #tpu.memory_space<vmem>>, vector<32x128xf32>
    %c0_1 = arith.constant 0 : index
    %c0_2 = arith.constant 0 : index
    %1 = vector.load %arg2[%c0_1, %c0_2] : memref<32x128xf32, #tpu.memory_space<vmem>>, vector<32x128xf32>
    %c0_3 = arith.constant 0 : index
    %c0_4 = arith.constant 0 : index
    %2 = vector.load %arg3[%c0_3, %c0_4] : memref<32x128xi8, #tpu.memory_space<vmem>>, vector<32x128xi8>
    %3 = arith.sitofp %2 : vector<32x128xi8> to vector<32x128xf32>
    %cst = arith.constant 1.000000e+00 : f32
    %4 = vector.broadcast %cst : f32 to vector<32x128xf32>
    %5 = arith.subf %4, %3 : vector<32x128xf32>
    %6 = math.absf %0 : vector<32x128xf32>
    %cst_5 = arith.constant 0.000000e+00 : f32
    %7 = vector.broadcast %cst_5 : f32 to vector<32x128xf32>
    %8 = arith.subf %7, %6 : vector<32x128xf32>
    %9 = math.exp %8 : vector<32x128xf32>
    %cst_6 = arith.constant 0.000000e+00 : f32
    %10 = vector.broadcast %cst_6 : f32 to vector<32x128xf32>
    %11 = arith.maximumf %0, %10 : vector<32x128xf32>
    %12 = arith.mulf %0, %5 : vector<32x128xf32>
    %13 = arith.subf %11, %12 : vector<32x128xf32>
    %14 = math.log1p %9 : vector<32x128xf32>
    %15 = arith.addf %13, %14 : vector<32x128xf32>
    %cst_7 = arith.constant 0.000000e+00 : f32
    %16 = vector.broadcast %cst_7 : f32 to vector<32x128xf32>
    %17 = arith.cmpf oge, %0, %16 : vector<32x128xf32>
    %cst_8 = arith.constant 1.000000e+00 : f32
    %18 = vector.broadcast %cst_8 : f32 to vector<32x128xf32>
    %19 = arith.select %17, %18, %9 : vector<32x128xi1>, vector<32x128xf32>
    %cst_9 = arith.constant 1.000000e+00 : f32
    %20 = vector.broadcast %cst_9 : f32 to vector<32x128xf32>
    %21 = arith.addf %20, %9 : vector<32x128xf32>
    %22 = arith.divf %19, %21 : vector<32x128xf32>
    %cst_10 = arith.constant 1.000000e+00 : f32
    %23 = vector.broadcast %cst_10 : f32 to vector<32x128xf32>
    %24 = arith.subf %23, %22 : vector<32x128xf32>
    %cst_11 = arith.constant 2.000000e+00 : f32
    %25 = vector.broadcast %cst_11 : f32 to vector<32x128xf32>
    %26 = arith.mulf %25, %22 : vector<32x128xf32>
    %cst_12 = arith.constant 1.000000e+00 : f32
    %27 = vector.broadcast %cst_12 : f32 to vector<32x128xf32>
    %28 = arith.subf %26, %27 : vector<32x128xf32>
    %29 = arith.mulf %5, %28 : vector<32x128xf32>
    %30 = arith.addf %24, %29 : vector<32x128xf32>
    %cst_13 = arith.constant 1.000000e+00 : f32
    %31 = vector.broadcast %cst_13 : f32 to vector<32x128xf32>
    %32 = arith.subf %31, %30 : vector<32x128xf32>
    %33 = arith.mulf %32, %32 : vector<32x128xf32>
    %cst_14 = arith.constant -5.000000e-01 : f32
    %34 = vector.broadcast %cst_14 : f32 to vector<32x128xf32>
    %35 = arith.mulf %5, %34 : vector<32x128xf32>
    %cst_15 = arith.constant 7.500000e-01 : f32
    %36 = vector.broadcast %cst_15 : f32 to vector<32x128xf32>
    %37 = arith.addf %35, %36 : vector<32x128xf32>
    %38 = arith.mulf %37, %33 : vector<32x128xf32>
    %39 = arith.mulf %38, %15 : vector<32x128xf32>
    %40 = math.absf %1 : vector<32x128xf32>
    %cst_16 = arith.constant 0.000000e+00 : f32
    %41 = vector.broadcast %cst_16 : f32 to vector<32x128xf32>
    %42 = arith.subf %41, %40 : vector<32x128xf32>
    %43 = math.exp %42 : vector<32x128xf32>
    %cst_17 = arith.constant 0.000000e+00 : f32
    %44 = vector.broadcast %cst_17 : f32 to vector<32x128xf32>
    %45 = arith.maximumf %1, %44 : vector<32x128xf32>
    %46 = arith.mulf %1, %3 : vector<32x128xf32>
    %47 = arith.subf %45, %46 : vector<32x128xf32>
    %48 = math.log1p %43 : vector<32x128xf32>
    %49 = arith.addf %47, %48 : vector<32x128xf32>
    %cst_18 = arith.constant 0.000000e+00 : f32
    %50 = vector.broadcast %cst_18 : f32 to vector<32x128xf32>
    %51 = arith.cmpf oge, %1, %50 : vector<32x128xf32>
    %cst_19 = arith.constant 1.000000e+00 : f32
    %52 = vector.broadcast %cst_19 : f32 to vector<32x128xf32>
    %53 = arith.select %51, %52, %43 : vector<32x128xi1>, vector<32x128xf32>
    %cst_20 = arith.constant 1.000000e+00 : f32
    %54 = vector.broadcast %cst_20 : f32 to vector<32x128xf32>
    %55 = arith.addf %54, %43 : vector<32x128xf32>
    %56 = arith.divf %53, %55 : vector<32x128xf32>
    %cst_21 = arith.constant 1.000000e+00 : f32
    %57 = vector.broadcast %cst_21 : f32 to vector<32x128xf32>
    %58 = arith.subf %57, %56 : vector<32x128xf32>
    %cst_22 = arith.constant 2.000000e+00 : f32
    %59 = vector.broadcast %cst_22 : f32 to vector<32x128xf32>
    %60 = arith.mulf %59, %56 : vector<32x128xf32>
    %cst_23 = arith.constant 1.000000e+00 : f32
    %61 = vector.broadcast %cst_23 : f32 to vector<32x128xf32>
    %62 = arith.subf %60, %61 : vector<32x128xf32>
    %63 = arith.mulf %3, %62 : vector<32x128xf32>
    %64 = arith.addf %58, %63 : vector<32x128xf32>
    %cst_24 = arith.constant 1.000000e+00 : f32
    %65 = vector.broadcast %cst_24 : f32 to vector<32x128xf32>
    %66 = arith.subf %65, %64 : vector<32x128xf32>
    %67 = arith.mulf %66, %66 : vector<32x128xf32>
    %cst_25 = arith.constant -5.000000e-01 : f32
    %68 = vector.broadcast %cst_25 : f32 to vector<32x128xf32>
    %69 = arith.mulf %3, %68 : vector<32x128xf32>
    %cst_26 = arith.constant 7.500000e-01 : f32
    %70 = vector.broadcast %cst_26 : f32 to vector<32x128xf32>
    %71 = arith.addf %69, %70 : vector<32x128xf32>
    %72 = arith.mulf %71, %67 : vector<32x128xf32>
    %73 = arith.mulf %72, %49 : vector<32x128xf32>
    %74 = arith.addf %39, %73 : vector<32x128xf32>
    %75 = tpu.iota {dimensions = array<i32: 0>} : vector<32x128xi32>
    %76 = tpu.iota {dimensions = array<i32: 1>} : vector<32x128xi32>
    %c32_i32 = arith.constant 32 : i32
    %77 = arith.muli %arg0, %c32_i32 : i32
    %78 = vector.broadcast %77 : i32 to vector<32x128xi32>
    %79 = arith.addi %78, %75 : vector<32x128xi32>
    %c128_i32 = arith.constant 128 : i32
    %80 = vector.broadcast %c128_i32 : i32 to vector<32x128xi32>
    %81 = arith.muli %79, %80 : vector<32x128xi32>
    %82 = arith.addi %81, %76 : vector<32x128xi32>
    %c16_i32 = arith.constant 16 : i32
    %83 = vector.broadcast %c16_i32 : i32 to vector<32x128xi32>
    %84 = arith.cmpi slt, %82, %83 : vector<32x128xi32>
    %cst_27 = arith.constant 0.000000e+00 : f32
    %85 = vector.broadcast %cst_27 : f32 to vector<32x128xf32>
    %86 = arith.select %84, %74, %85 : vector<32x128xi1>, vector<32x128xf32>
    %87 = vector.shape_cast %86 : vector<32x128xf32> to vector<4x8x128xf32>
    %cst_28 = arith.constant dense<0.000000e+00> : vector<8x128xf32>
    %88 = vector.multi_reduction <add>, %87, %cst_28 [0] : vector<4x8x128xf32> to vector<8x128xf32>
    %c0_29 = arith.constant 0 : index
    %c0_30 = arith.constant 0 : index
    %c0_31 = arith.constant 0 : index
    %89 = vector.load %arg4[%c0_29, %c0_30, %c0_31] : memref<1x8x128xf32, #tpu.memory_space<vmem>>, vector<1x8x128xf32>
    %90 = vector.shape_cast %89 : vector<1x8x128xf32> to vector<8x128xf32>
    %91 = vector.shape_cast %88 : vector<8x128xf32> to vector<1x8x128xf32>
    tpu.vector_store %arg4[%c0_29, %c0_30, %c0_31], %91 {strides = array<i32>} : memref<1x8x128xf32, #tpu.memory_space<vmem>>, vector<1x8x128xf32>,
    return
  }
  func.func @transform_0(%arg0: i32) -> (i32, i32) {
    %c0_i32 = arith.constant 0 : i32
    %c0_i32_0 = arith.constant 0 : i32
    return %arg0, %c0_i32 : i32, i32
  }
  func.func @transform_1(%arg0: i32) -> (i32, i32) {
    %c0_i32 = arith.constant 0 : i32
    %c0_i32_0 = arith.constant 0 : i32
    return %arg0, %c0_i32 : i32, i32
  }
  func.func @transform_2(%arg0: i32) -> (i32, i32) {
    %c0_i32 = arith.constant 0 : i32
    %c0_i32_0 = arith.constant 0 : i32
    return %arg0, %c0_i32 : i32, i32
  }
  func.func @transform_3(%arg0: i32) -> (i32, i32, i32) {
    %c0_i32 = arith.constant 0 : i32
    %c0_i32_0 = arith.constant 0 : i32
    %c0_i32_1 = arith.constant 0 : i32
    return %arg0, %c0_i32, %c0_i32_0 : i32, i32, i32
  }
}

</mosaic_0001>

<bundles_post_ra>
// kernel: tpu_custom_call.1
= control target key start
LH: loop header
LB: loop body
LE: loop exit
PB: predicated region body
PF: predicated region fallthrough
CT: control target
= control target key end

     0   :  { %8 = vsyncpa [#allocation3], 0  ;;  %s917_s0 = inlined_call_operand.hbm [shape: f32[32,128], index: 0, kind: input, shape index: {}]   ;;  %s918_s1 = inlined_call_operand.hbm [shape: f32[32,128], index: 1, kind: input, shape index: {}]   ;;  %s919_s2 = inlined_call_operand.hbm [shape: s8[32,128], index: 2, kind: input, shape index: {}]   ;;  %s920_s3 = inlined_call_operand.hbm [shape: f32[1,8,128], index: 3, kind: output, shape index: {}]  }
   0x1   :  { %9 = vsyncpa [#allocation6], 0 }
   0x2   :  { %10 = vsyncpa [#allocation4], 0  ;;  %s540_s12 = smov [#allocation5]   ;;  %s541_s14 = smov [#allocation2]  }
   0x3   :  { %s28_s13 = sshll.u32 %s540_s12, 4  ;;  %s16_s15 = sshll.u32 %s541_s14, 4  ;;  %s29_s13 = int_to_ptr.vmem [resolvable:$true] %s28_s13  ;;  %s17_s15 = int_to_ptr.vmem [resolvable:$true] %s16_s15 }
   0x4   :  { %s462_s16 = scalar_lea.vmem %s29_s13, 512  ;;  %p467_p1 = scmp.lt.s32.totalorder %s29_s13, %s29_s13 }
   0x5   :  { %p463_p0 = scmp.ne.s32.totalorder %s29_s13, %s462_s16  ;;  %p468_p2 = scmp.lt.s32.totalorder %s462_s16, %s462_s16 }
   0x7   :  { %p469_p3 = por %p468_p2, %p467_p1 }
   0x9   :  { %p470_p4 = pnand %p469_p3, %p463_p0 }
   0xb   :  { %473 = shalt.err (!%p470_p4)
}
   0xc   :  { %s542_s17 = smov 128   ;;  %s543_s18 = smov 8  }
   0xd   :  { %34 = dma.hbm_to_vmem [thread:$0]  %s918_s1, 512, %s29_s13, [#allocation6], %s542_s17, %s542_s17, %s543_s18  }
   0xe   :  { %s482_s21 = scalar_lea.vmem %s17_s15, 512  ;;  %p487_p6 = scmp.lt.s32.totalorder %s17_s15, %s17_s15 }
   0xf   :  { %p483_p5 = scmp.ne.s32.totalorder %s17_s15, %s482_s21  ;;  %p488_p7 = scmp.lt.s32.totalorder %s482_s21, %s482_s21 }
  0x11   :  { %p489_p8 = por %p488_p7, %p487_p6 }
  0x13   :  { %p490_p9 = pnand %p489_p8, %p483_p5 }
  0x15   :  { %493 = shalt.err (!%p490_p9)
}
  0x16   :  { %22 = dma.hbm_to_vmem [thread:$0]  %s917_s0, 512, %s17_s15, [#allocation3], %s542_s17, %s542_s17, %s543_s18  }
  0x17   :  { %s544_s24 = smov [#allocation7]  }
  0x18   :  { %s41_s25 = sshll.u32 %s544_s24, 4  ;;  %s42_s25 = int_to_ptr.vmem [resolvable:$true] %s41_s25 }
  0x19   :  { %s502_s26 = scalar_lea.vmem %s42_s25, 128  ;;  %p507_p11 = scmp.lt.s32.totalorder %s42_s25, %s42_s25 }
  0x1a   :  { %p503_p10 = scmp.ne.s32.totalorder %s42_s25, %s502_s26  ;;  %p508_p12 = scmp.lt.s32.totalorder %s502_s26, %s502_s26 }
  0x1c   :  { %p509_p13 = por %p508_p12, %p507_p11 }
  0x1e   :  { %p510_p0 = pnand %p509_p13, %p503_p10 }
  0x20   :  { %513 = shalt.err (!%p510_p0)
}
  0x21   :  { %44 = dma.hbm_to_vmem [thread:$0]  %s919_s2, 128, %s42_s25, [#allocation6]  }
  0x22   :  { %534 = dma.done.wait [#allocation3], 512  }
  0x23   :  { %535 = vsyncadd [#allocation3], 4294966784 }
  0x24   :  { %536 = dma.done.wait [#allocation6], 640  }
  0x25   :  { %537 = vsyncadd [#allocation6], 4294966656  ;;  %v575_v0 = vld [vmem:[#allocation2] sm:$0xff]  ;;  %v577_v1 = vld [vmem:[#allocation2 + $0x8] sm:$0xff]  ;;  %v343_v23 = vlaneseq  ;;  %s545_s0 = smov [#allocation8]  }
  0x26   :  { %v75_v2 = vand.u32 2147483647, %v575_v0  ;;  %v580_v3 = vld [vmem:[#allocation2 + $0x10] sm:$0xff]  ;;  %v76_v4 = vand.u32 2147483647, %v577_v1  ;;  %v583_v5 = vld [vmem:[#allocation2 + $0x18] sm:$0xff] }
  0x27   :  { %v77_v8 = vand.u32 2147483647, %v580_v3  ;;  %v78_v10 = vand.u32 2147483647, %v583_v5  ;;  %v587_v13 = vld [vmem:[#allocation5] sm:$0xff]  ;;  %v589_v14 = vld [vmem:[#allocation5 + $0x8] sm:$0xff] }
  0x28   :  { %v79_v6 = vsub.f32 0.0, %v75_v2  ;;  %v80_v7 = vsub.f32 0.0, %v76_v4  ;;  %v207_v17 = vand.u32 2147483647, %v587_v13  ;;  %v208_v18 = vand.u32 2147483647, %v589_v14 }
  0x29   :  { %v81_v12 = vsub.f32 0.0, %v77_v8  ;;  %v82_v15 = vsub.f32 0.0, %v78_v10  ;;  %v62_v24 = vld [vmem:[#allocation7] sm:$0xff]  ;;  %v344_v27 = vshrl.u32 %v343_v23, 7  ;;  %v597_v31 = vld [vmem:[#allocation5 + $0x10] sm:$0xff]  ;;  %v599_v33 = vld [vmem:[#allocation5 + $0x18] sm:$0xff] }
  0x2a   :  { %v83_v9 = vmul.f32 1.442695, %v79_v6  ;;  %v85_v11 = vmul.f32 1.442695, %v80_v7  ;;  %v211_v20 = vsub.f32 0.0, %v207_v17  ;;  %v212_v21 = vsub.f32 0.0, %v208_v18 }
  0x2b   :  { %v87_v16 = vmul.f32 1.442695, %v81_v12  ;;  %v89_v19 = vmul.f32 1.442695, %v82_v15  ;;  %v63_v26 = vunpack.c.0.s8 %v62_v24  ;;  %v64_v30 = vunpack.c.1.s8 %v62_v24  ;;  %s382_s2 = sshll.u32 %s545_s0, 4  ;;  %s383_s2 = int_to_ptr.vmem [resolvable:$true] %s382_s2 }
  0x2c   :  { %406 = vpow2.f32 %v83_v9  ;;  %v215_v22 = vmul.f32 1.442695, %v211_v20  ;;  %v217_v25 = vmul.f32 1.442695, %v212_v21  ;;  %v65_v32 = vunpack.c.2.s8 %v62_v24  ;;  %s514_s28 = scalar_lea.vmem %s383_s2, 128  ;;  %p519_p2 = scmp.lt.s32.totalorder %s383_s2, %s383_s2 }
  0x2d   :  { %408 = vpow2.f32 %v85_v11  ;;  %v66_v34 = vunpack.c.3.s8 %v62_v24  ;;  %v601_v35 = vcvt.s32.f32 %v63_v26  ;;  %v345_v37 = vadd.s32 8, %v344_v27  ;;  %p515_p1 = scmp.ne.s32.totalorder %s383_s2, %s514_s28  ;;  %p520_p3 = scmp.lt.s32.totalorder %s514_s28, %s514_s28 }
  0x2e   :  { %410 = vpow2.f32 %v87_v16  ;;  %v607_v39 = vadd.s32 16, %v344_v27  ;;  %v609_v40 = vand.u32 127, %v343_v23  ;;  %v356_v41 = vmul.u32 128, %v344_v27 }
  0x2f   :  { %412 = vpow2.f32 %v89_v19  ;;  %v611_v42 = vcvt.s32.f32 %v64_v30  ;;  %v209_v43 = vand.u32 2147483647, %v597_v31  ;;  %v614_v44 = vcvt.s32.f32 %v65_v32  ;;  %p521_p4 = por %p520_p3, %p519_p2 }
  0x30   :  { %414 = vpow2.f32 %v215_v22  ;;  %925 = vst [vmem:[#allocation12_spill] sm:$0xff] %v607_v39  ;;  %926 = vst [vmem:[#allocation13_spill] sm:$0xff] %v609_v40  ;;  %v210_v45 = vand.u32 2147483647, %v599_v33  ;;  %v617_v46 = vadd.s32 24, %v344_v27  ;;  %v621_v48 = vcvt.s32.f32 %v66_v34 }
  0x31   :  { %416 = vpow2.f32 %v217_v25  ;;  %v624_v49 = vsub.f32 1.0, %v601_v35  ;;  %v357_v50 = vmul.u32 128, %v345_v37  ;;  %v629_v52 = vadd.s32 %v356_v41, %v609_v40  ;;  %p522_p5 = pnand %p521_p4, %p515_p1 }
  0x32   :  { %927 = vst [vmem:[#allocation14_spill] sm:$0xff] %v617_v46  ;;  %v634_v54 = vsub.f32 1.0, %v611_v42  ;;  %v91_v55 = vmax.f32 %v575_v0, 0.0  ;;  %v213_v57 = vsub.f32 0.0, %v209_v43  ;;  %v640_v58 = vsub.f32 1.0, %v614_v44 }
  0x33   :  { %v95_v56 = vmul.f32 %v624_v49, %v575_v0  ;;  %v214_v60 = vsub.f32 0.0, %v210_v45  ;;  %v645_v62 = vsub.f32 1.0, %v621_v48  ;;  %v92_v63 = vmax.f32 %v577_v1, 0.0 }
  0x34   :  { %v96_v2 = vmul.f32 %v634_v54, %v577_v1  ;;  %v651_v4 = vadd.s32 %v357_v50, %v609_v40  ;;  %v93_v7 = vmax.f32 %v580_v3, 0.0  ;;  %v94_v8 = vmax.f32 %v583_v5, 0.0 }
  0x35   :  { %v97_v9 = vmul.f32 %v640_v58, %v580_v3  ;;  %v98_v12 = vmul.f32 %v645_v62, %v583_v5  ;;  %v666_v15 = vsub.f32 %v91_v55, %v95_v56  ;;  %vm143_vm0 = vcmp.ge.f32.partialorder %v575_v0, 0.0 }
  0x36   :  { %v219_v16 = vmul.f32 1.442695, %v213_v57  ;;  %v191_v17 = vmul.f32 -0.5, %v624_v49  ;;  %v192_v18 = vmul.f32 -0.5, %v634_v54  ;;  %v221_v19 = vmul.f32 1.442695, %v214_v60 }
  0x37   :  { %v671_v20 = vsub.f32 %v92_v63, %v96_v2  ;;  %v193_v21 = vmul.f32 -0.5, %v640_v58  ;;  %v675_v23 = vsub.f32 %v93_v7, %v97_v9  ;;  %vm144_vm1 = vcmp.ge.f32.partialorder %v577_v1, 0.0 }
  0x38   :  { %v682_v25 = vsub.f32 %v94_v8, %v98_v12  ;;  %vm145_vm2 = vcmp.ge.f32.partialorder %v580_v3, 0.0  ;;  %v194_v26 = vmul.f32 -0.5, %v645_v62  ;;  %v686_v27 = vadd.f32 0.75, %v191_v17 }
  0x39   :  { %v593_v28 = vpop.eup %406  ;;  %v688_v30 = vadd.f32 0.75, %v192_v18  ;;  %v227_v32 = vmul.f32 %v601_v35, %v587_v13  ;;  %vm146_vm3 = vcmp.ge.f32.partialorder %v583_v5, 0.0  ;;  %v223_v37 = vmax.f32 %v587_v13, 0.0 }
  0x3a   :  { %v595_v29 = vpop.eup %408  ;;  %v103_v36 = vadd.f32 1.0, %v593_v28  ;;  %928 = vst [vmem:[#allocation15_spill] sm:$0xff] %v682_v25  ;;  %v106_v34 = vmul.f32 -0.5, %v593_v28  ;;  %v147_v43 = vsel %vm143_vm0, 1.0, %v593_v28  ;;  %v224_v45 = vmax.f32 %v589_v14, 0.0 }
  0x3b   :  { %v605_v38 = vadd.f32 1.0, %v595_v29  ;;  %v619_v47 = vpop.eup %410  ;;  %v228_v50 = vmul.f32 %v611_v42, %v589_v14  ;;  %v115_v56 = vmul.f32 -0.5, %v595_v29  ;;  %v148_v57 = vsel %vm144_vm1, 1.0, %v595_v29 }
  0x3c   :  { %418 = vrcp.f32 %v103_v36  ;;  %v631_v53 = vpop.eup %412  ;;  %v121_v59 = vadd.f32 1.0, %v619_v47  ;;  %v225_v60 = vmax.f32 %v597_v31, 0.0  ;;  %v229_v0 = vmul.f32 %v614_v44, %v597_v31 }
  0x3d   :  { %420 = vrcp.f32 %v605_v38  ;;  %v653_v6 = vpop.eup %414  ;;  %v660_v10 = vadd.f32 1.0, %v631_v53  ;;  %v124_v63 = vmul.f32 -0.5, %v619_v47  ;;  %v226_v2 = vmax.f32 %v599_v33, 0.0 }
  0x3e   :  { %v662_v11 = vpop.eup %416  ;;  %422 = vrcp.f32 %v121_v59  ;;  %v235_v22 = vadd.f32 1.0, %v653_v6  ;;  %v230_v7 = vmul.f32 %v621_v48, %v599_v33  ;;  %v107_v8 = vadd.f32 1.0, %v106_v34 }
  0x3f   :  { %424 = vlog2.f32 %v103_v36  ;;  %v680_v24 = vadd.f32 1.0, %v662_v11  ;;  %v694_v36 = vadd.f32 0.75, %v193_v21  ;;  %v133_v9 = vmul.f32 -0.5, %v631_v53 }
  0x40   :  { %426 = vrcp.f32 %v660_v10  ;;  %v719_v1 = vadd.f32 0.75, %v194_v26  ;;  %v723_v17 = vsub.f32 %v223_v37, %v227_v32  ;;  %v109_v18 = vand.u32 2147483647, %v593_v28 }
  0x41   :  { %428 = vpow2.f32 %v219_v16  ;;  %929 = vst [vmem:[#allocation16_spill] sm:$0xff] %v694_v36  ;;  %v728_v21 = vsub.f32 %v225_v60, %v229_v0  ;;  %vm275_vm4 = vcmp.ge.f32.partialorder %v587_v13, 0.0  ;;  %v118_v34 = vand.u32 2147483647, %v595_v29 }
  0x42   :  { %430 = vpow2.f32 %v221_v19  ;;  %930 = vst [vmem:[#allocation17_spill] sm:$0xff] %v719_v1  ;;  %v116_v19 = vadd.f32 1.0, %v115_v56  ;;  %vm276_vm5 = vcmp.ge.f32.partialorder %v589_v14, 0.0  ;;  %v736_v26 = vmul.f32 %v593_v28, %v107_v8 }
  0x43   :  { %432 = vrcp.f32 %v235_v22  ;;  %931 = vst [vmem:[#allocation18_spill] sm:$0xff] %v728_v21  ;;  %v134_v32 = vadd.f32 1.0, %v133_v9  ;;  %v149_v37 = vsel %vm145_vm2, 1.0, %v619_v47  ;;  %vm746_vm6 = vcmp.lt.f32.partialorder %v109_v18, 0.0004427343 }
  0x44   :  { %434 = vrcp.f32 %v680_v24  ;;  %v751_v0 = vmul.f32 %v595_v29, %v116_v19  ;;  %v324_v18 = vmul.f32 -0.5, %v611_v42  ;;  %v773_v19 = vmul.f32 -0.5, %v614_v44 }
  0x45   :  { %436 = vlog2.f32 %v605_v38  ;;  %v725_v38 = vsub.f32 %v224_v45, %v228_v50  ;;  %v769_v9 = vmul.f32 %v631_v53, %v134_v32  ;;  %vm775_vm7 = vcmp.lt.f32.partialorder %v118_v34, 0.0004427343 }
  0x46   :  { %438 = vlog2.f32 %v121_v59  ;;  %v279_v34 = vsel %vm275_vm4, 1.0, %v653_v6  ;;  %v250_v13 = vand.u32 2147483647, %v662_v11  ;;  %vm277_vm9 = vcmp.ge.f32.partialorder %v597_v31, 0.0 }
  0x47   :  { %440 = vlog2.f32 %v660_v10  ;;  %vm278_vm11 = vcmp.ge.f32.partialorder %v599_v33, 0.0  ;;  %vm364_vm0 = vcmp.lt.s32.totalorder %v629_v52, 16  ;;  %vm365_vm1 = vcmp.lt.s32.totalorder %v651_v4, 16 }
  0x48   :  { %442 = vlog2.f32 %v235_v22  ;;  %vm818_vm12 = vcmp.lt.f32.partialorder %v250_v13, 0.0004427343 }
  0x49   :  { %v419_v41 = vpop.eup %418  ;;  %444 = vlog2.f32 %v680_v24  ;;  %v781_v24 = vmul.f32 -0.5, %v621_v48 }
  0x4a   :  { %v421_v55 = vpop.eup %420  ;;  %v717_v12 = vmul.f32 %v419_v41, %v147_v43  ;;  %v125_v41 = vadd.f32 1.0, %v124_v63  ;;  %v732_v43 = vsub.f32 %v226_v2, %v230_v7  ;;  %v238_v63 = vmul.f32 -0.5, %v653_v6 }
  0x4b   :  { %v721_v16 = vmul.f32 %v421_v55, %v148_v57  ;;  %v423_v59 = vpop.eup %422  ;;  %v127_v55 = vand.u32 2147483647, %v619_v47  ;;  %v323_v57 = vmul.f32 -0.5, %v601_v35  ;;  %v150_v7 = vsel %vm146_vm3, 1.0, %v631_v53  ;;  %937 = vst [vmem:[#allocation20_spill] sm:$0xff] %v781_v24 }
  0x4c   :  { %932 = vst [vmem:[#allocation19_spill] sm:$0xff] %v732_v43  ;;  %v167_v45 = vmul.f32 2.0, %v717_v12  ;;  %v425_v50 = vpop.eup %424  ;;  %v758_v10 = vmul.f32 %v619_v47, %v125_v41  ;;  %v763_v8 = vmul.f32 %v423_v59, %v149_v37  ;;  %v247_v59 = vmul.f32 -0.5, %v662_v11 }
  0x4d   :  { %v168_v56 = vmul.f32 2.0, %v721_v16  ;;  %v427_v60 = vpop.eup %426  ;;  %v783_v37 = vadd.f32 0.75, %v323_v57  ;;  %vm785_vm8 = vcmp.lt.f32.partialorder %v127_v55, 0.0004427343  ;;  %v239_v61 = vadd.f32 1.0, %v238_v63 }
  0x4e   :  { %v755_v2 = vpop.eup %428  ;;  %v392_v22 = vadd.f32 -1.0, %v167_v45  ;;  %v796_v3 = vmul.f32 %v427_v60, %v150_v7  ;;  %v169_v57 = vmul.f32 2.0, %v763_v8  ;;  %v241_v55 = vand.u32 2147483647, %v653_v6 }
  0x4f   :  { %v766_v29 = vpop.eup %430  ;;  %v393_v5 = vadd.f32 -1.0, %v168_v56  ;;  %v253_v51 = vadd.f32 1.0, %v755_v2  ;;  %v280_v56 = vsel %vm276_vm5, 1.0, %v662_v11  ;;  %v105_v63 = vmul.f32 0.6931472, %v425_v50 }
  0x50   :  { %v433_v47 = vpop.eup %432  ;;  %v262_v46 = vadd.f32 1.0, %v766_v29  ;;  %v163_v40 = vsub.f32 1.0, %v717_v12  ;;  %v175_v43 = vmul.f32 %v392_v22, %v624_v49  ;;  %v164_v21 = vsub.f32 1.0, %v721_v16 }
  0x51   :  { %v435_v32 = vpop.eup %434  ;;  %v176_v14 = vmul.f32 %v393_v5, %v634_v54  ;;  %v288_v60 = vmul.f32 %v433_v47, %v279_v34  ;;  %v807_v1 = vmul.f32 %v653_v6, %v239_v61  ;;  %v248_v25 = vadd.f32 1.0, %v247_v59 }
  0x52   :  { %v437_v39 = vpop.eup %436  ;;  %v290_v7 = vmul.f32 %v435_v32, %v280_v56  ;;  %446 = vrcp.f32 %v253_v51  ;;  %v810_v50 = vadd.f32 0.75, %v324_v18  ;;  %v170_v49 = vmul.f32 2.0, %v796_v3 }
  0x53   :  { %v439_v24 = vpop.eup %438  ;;  %v114_v12 = vmul.f32 0.6931472, %v437_v39  ;;  %v394_v22 = vadd.f32 -1.0, %v169_v57  ;;  %vm813_vm10 = vcmp.lt.f32.partialorder %v241_v55, 0.0004427343  ;;  %448 = vrcp.f32 %v262_v46 }
  0x54   :  { %v179_v54 = vadd.f32 %v175_v43, %v163_v40  ;;  %450 = vlog2.f32 %v253_v51  ;;  %v299_v6 = vmul.f32 2.0, %v288_v60  ;;  %v300_v18 = vmul.f32 2.0, %v290_v7  ;;  %v441_v59 = vpop.eup %440 }
  0x55   :  { %v111_v39 = vsel %vm746_vm6, %v736_v26, %v105_v63  ;;  %v825_v47 = vmul.f32 0.6931472, %v439_v24  ;;  %v180_v5 = vadd.f32 %v176_v14, %v164_v21  ;;  %452 = vlog2.f32 %v262_v46  ;;  %v443_v43 = vpop.eup %442 }
  0x56   :  { %v295_v32 = vsub.f32 1.0, %v288_v60  ;;  %v296_v34 = vsub.f32 1.0, %v290_v7  ;;  %v396_v56 = vadd.f32 -1.0, %v299_v6  ;;  %v397_v40 = vadd.f32 -1.0, %v300_v18  ;;  %v445_v36 = vpop.eup %444 }
  0x57   :  { %v165_v57 = vsub.f32 1.0, %v763_v8  ;;  %v395_v55 = vadd.f32 -1.0, %v170_v49  ;;  %v177_v51 = vmul.f32 %v394_v22, %v640_v58  ;;  %v249_v13 = vmul.f32 %v662_v11, %v248_v25 }
  0x58   :  { %v120_v26 = vsel %vm775_vm7, %v751_v0, %v114_v12  ;;  %v183_v21 = vsub.f32 1.0, %v179_v54  ;;  %v307_v46 = vmul.f32 %v396_v56, %v601_v35  ;;  %v308_v28 = vmul.f32 %v397_v40, %v611_v42 }
  0x59   :  { %v129_v8 = vsel %vm785_vm8, %v758_v10, %v825_v47  ;;  %v139_v24 = vadd.f32 %v111_v39, %v666_v15  ;;  %v184_v58 = vsub.f32 1.0, %v180_v5  ;;  %v256_v11 = vmul.f32 -0.5, %v755_v2 }
  0x5a   :  { %v166_v25 = vsub.f32 1.0, %v796_v3  ;;  %v237_v63 = vmul.f32 0.6931472, %v443_v43  ;;  %v311_v41 = vadd.f32 %v307_v46, %v295_v32  ;;  %v312_v0 = vadd.f32 %v308_v28, %v296_v34 }
  0x5b   :  { %v178_v14 = vmul.f32 %v395_v55, %v645_v62  ;;  %v181_v35 = vadd.f32 %v177_v51, %v165_v57  ;;  %v246_v60 = vmul.f32 0.6931472, %v445_v36  ;;  %v259_v42 = vand.u32 2147483647, %v755_v2 }
  0x5c   :  { %v187_v7 = vmul.f32 %v183_v21, %v183_v21  ;;  %v265_v12 = vmul.f32 -0.5, %v766_v29  ;;  %v315_v49 = vsub.f32 1.0, %v311_v41  ;;  %v316_v22 = vsub.f32 1.0, %v312_v0 }
  0x5d   :  { %v132_v15 = vmul.f32 0.6931472, %v441_v59  ;;  %v944_v54 = vand.u32 2147483647, %v631_v53  ;;  %v188_v3 = vmul.f32 %v184_v58, %v184_v58  ;;  %v257_v18 = vadd.f32 1.0, %v256_v11 }
  0x5e   :  { %v281_v62 = vsel %vm277_vm9, 1.0, %v755_v2  ;;  %v243_v36 = vsel %vm813_vm10, %v807_v1, %v237_v63  ;;  %v282_v39 = vsel %vm278_vm11, 1.0, %v766_v29  ;;  %v319_v5 = vmul.f32 %v315_v49, %v315_v49 }
  0x5f   :  { %vm847_vm13 = vcmp.lt.f32.partialorder %v944_v54, 0.0004427343  ;;  %v320_v53 = vmul.f32 %v316_v22, %v316_v22  ;;  %v447_v59 = vpop.eup %446  ;;  %v140_v32 = vadd.f32 %v120_v26, %v671_v20  ;;  %v182_v34 = vadd.f32 %v178_v14, %v166_v25  ;;  %v951_v22 = vld [vmem:[#allocation16_spill] sm:$0xff] }
  0x60   :  { %v185_v56 = vsub.f32 1.0, %v181_v35  ;;  %v252_v40 = vsel %vm818_vm12, %v249_v13, %v246_v60  ;;  %v449_v31 = vpop.eup %448  ;;  %v199_v43 = vmul.f32 %v686_v27, %v187_v7  ;;  %vm864_vm14 = vcmp.lt.f32.partialorder %v259_v42, 0.0004427343 }
  0x61   :  { %v266_v1 = vadd.f32 1.0, %v265_v12  ;;  %v292_v33 = vmul.f32 %v447_v59, %v281_v62  ;;  %v451_v57 = vpop.eup %450  ;;  %v200_v55 = vmul.f32 %v688_v30, %v188_v3  ;;  %v258_v51 = vmul.f32 %v755_v2, %v257_v18  ;;  %v952_v18 = vld [vmem:[#allocation15_spill] sm:$0xff] }
  0x62   :  { %v271_v20 = vadd.f32 %v243_v36, %v723_v17  ;;  %v294_v26 = vmul.f32 %v449_v31, %v282_v39  ;;  %v453_v21 = vpop.eup %452  ;;  %v272_v61 = vadd.f32 %v252_v40, %v725_v38  ;;  %v331_v27 = vmul.f32 %v783_v37, %v319_v5  ;;  %v953_v36 = vld [vmem:[#allocation17_spill] sm:$0xff]  ;;  %v954_v5 = vld [vmem:[#allocation20_spill] sm:$0xff] }
  0x63   :  { %v301_v13 = vmul.f32 2.0, %v292_v33  ;;  %v332_v46 = vmul.f32 %v810_v50, %v320_v53  ;;  %v186_v28 = vsub.f32 1.0, %v182_v34  ;;  %v189_v58 = vmul.f32 %v185_v56, %v185_v56  ;;  %v956_v53 = vld [vmem:[#allocation19_spill] sm:$0xff]  ;;  %v957_v34 = vld [vmem:[#allocation13_spill] sm:$0xff]  ;;  %v958_v56 = vld [vmem:[#allocation12_spill] sm:$0xff] }
  0x64   :  { %v268_v11 = vand.u32 2147483647, %v766_v29  ;;  %v302_v25 = vmul.f32 2.0, %v294_v26  ;;  %v203_v63 = vmul.f32 %v199_v43, %v139_v24  ;;  %v267_v30 = vmul.f32 %v766_v29, %v266_v1  ;;  %v960_v43 = vld [vmem:[#allocation14_spill] sm:$0xff] }
  0x65   :  { %v297_v2 = vsub.f32 1.0, %v292_v33  ;;  %v398_v41 = vadd.f32 -1.0, %v301_v13  ;;  %v204_v17 = vmul.f32 %v200_v55, %v140_v32  ;;  %v255_v0 = vmul.f32 0.6931472, %v451_v57 }
  0x66   :  { %v298_v14 = vsub.f32 1.0, %v294_v26  ;;  %v399_v35 = vadd.f32 -1.0, %v302_v25  ;;  %v264_v38 = vmul.f32 0.6931472, %v453_v21  ;;  %v335_v37 = vmul.f32 %v331_v27, %v271_v20 }
  0x67   :  { %v309_v60 = vmul.f32 %v398_v41, %v614_v44  ;;  %v336_v42 = vmul.f32 %v332_v46, %v272_v61  ;;  %v190_v50 = vmul.f32 %v186_v28, %v186_v28  ;;  %vm877_vm15 = vcmp.lt.f32.partialorder %v268_v11, 0.0004427343 }
  0x68   :  { %v310_v24 = vmul.f32 %v399_v35, %v621_v48  ;;  %v138_v29 = vsel %vm847_vm13, %v769_v9, %v132_v15  ;;  %v329_v49 = vadd.f32 0.75, %v773_v19  ;;  %v141_v44 = vadd.f32 %v129_v8, %v675_v23  ;;  %v955_v23 = vld [vmem:[#allocation18_spill] sm:$0xff] }
  0x69   :  { %v313_v12 = vadd.f32 %v309_v60, %v297_v2  ;;  %v201_v48 = vmul.f32 %v951_v22, %v189_v58  ;;  %v261_v54 = vsel %vm864_vm14, %v258_v51, %v255_v0  ;;  %v270_v9 = vsel %vm877_vm15, %v267_v30, %v264_v38 }
  0x6a   :  { %v314_v3 = vadd.f32 %v310_v24, %v298_v14  ;;  %v339_v19 = vadd.f32 %v335_v37, %v203_v63  ;;  %v340_v6 = vadd.f32 %v336_v42, %v204_v17  ;;  %v142_v62 = vadd.f32 %v138_v29, %v952_v18 }
  0x6b   :  { %v317_v15 = vsub.f32 1.0, %v313_v12  ;;  %v202_v45 = vmul.f32 %v953_v36, %v190_v50  ;;  %v330_v10 = vadd.f32 0.75, %v954_v5  ;;  %v273_v47 = vadd.f32 %v261_v54, %v955_v23 }
  0x6c   :  { %v318_v39 = vsub.f32 1.0, %v314_v3  ;;  %v274_v59 = vadd.f32 %v270_v9, %v956_v53  ;;  %v959_v40 = vmul.u32 128, %v958_v56  ;;  %v961_v16 = vmul.u32 128, %v960_v43 }
  0x6d   :  { %v321_v8 = vmul.f32 %v317_v15, %v317_v15  ;;  %v205_v33 = vmul.f32 %v201_v48, %v141_v44  ;;  %v368_v55 = vsel %vm364_vm0, %v339_v19, 0.0  ;;  %v369_v51 = vsel %vm365_vm1, %v340_v6, 0.0 }
  0x6e   :  { %v322_v32 = vmul.f32 %v318_v39, %v318_v39  ;;  %v362_v31 = vadd.s32 %v959_v40, %v957_v34  ;;  %v363_v1 = vadd.s32 %v961_v16, %v957_v34  ;;  %v206_v20 = vmul.f32 %v202_v45, %v142_v62 }
  0x6f   :  { %v333_v57 = vmul.f32 %v329_v49, %v321_v8  ;;  %v372_v13 = vadd.f32 %v369_v51, %v368_v55 }
  0x70   :  { %v334_v26 = vmul.f32 %v330_v10, %v322_v32  ;;  %vm366_vm2 = vcmp.lt.s32.totalorder %v362_v31, 16  ;;  %vm367_vm3 = vcmp.lt.s32.totalorder %v363_v1, 16 }
  0x71   :  { %v337_v21 = vmul.f32 %v333_v57, %v273_v47 }
  0x72   :  { %v338_v61 = vmul.f32 %v334_v26, %v274_v59 }
  0x73   :  { %v341_v27 = vadd.f32 %v337_v21, %v205_v33 }
  0x74   :  { %v342_v46 = vadd.f32 %v338_v61, %v206_v20 }
  0x75   :  { %v370_v28 = vsel %vm366_vm2, %v341_v27, 0.0 }
  0x76   :  { %v371_v58 = vsel %vm367_vm3, %v342_v46, 0.0  ;;  %v373_v11 = vadd.f32 %v372_v13, %v370_v28 }
  0x78   :  { %v374_v25 = vadd.f32 %v373_v11, %v371_v58 }
  0x7a   :  { %375 = vst [vmem:[#allocation8] sm:$0xff] %v374_v25 }
  0x7b   :  { %525 = shalt.err (!%p522_p5)
}
  0x7c   :  { %385 = dma.vmem_to_hbm [thread:$0]  %s383_s2, 128, %s920_s3, [#allocation4]  }
  0x7d   :  { %538 = dma.done.wait [#allocation4], 128  }
  0x7e   :  { %539 = vsyncadd [#allocation4], 4294967168 }
  0x7f   :  { %389 = vsyncpa [#allocation3], 1 }
  0x80   :  { %390 = vsyncpa [#allocation6], 1 }
  0x81   :  { %391 = vsyncpa [#allocation4], 1 }

</bundles_post_ra>
